<compile_context>
chip_gen: v7x
topology: tpu7x:2x2x1
jax: 0.10.0
libtpu: 0.0.40
codegen_flags: <defaults>
</compile_context>

<pallas_src>
import functools

import jax
import jax.numpy as jnp
from jax.experimental import pallas as pl
from jax.experimental.pallas import tpu as pltpu


# ---------------------------------------------------------------------------
# Kernel 1: projection + per-head attention logits, tiled over node rows.
# ---------------------------------------------------------------------------
def _proj_kernel(x_ref, w_ref, al_ref, ar_ref, h_ref, el_ref, er_ref):
    h = jnp.dot(x_ref[...], w_ref[...], preferred_element_type=jnp.float32)
    h_ref[...] = h
    # AL / AR are block-diagonal (H*D, H) attention vectors -> one MXU matmul
    # produces the logits for every head at once (no 8-wide column slices).
    el_ref[...] = jnp.dot(h, al_ref[...], preferred_element_type=jnp.float32)
    er_ref[...] = jnp.dot(h, ar_ref[...], preferred_element_type=jnp.float32)


def _project(x, w, al_blk, ar_blk, *, tile_n=512):
    n, f_in = x.shape
    hd = w.shape[1]
    nh = al_blk.shape[1]
    tn = n if n <= tile_n else tile_n
    row = lambda i: (i, 0)
    full = lambda i: (0, 0)
    return pl.pallas_call(
        _proj_kernel,
        out_shape=(jax.ShapeDtypeStruct((n, hd), jnp.float32),
                   jax.ShapeDtypeStruct((n, nh), jnp.float32),
                   jax.ShapeDtypeStruct((n, nh), jnp.float32)),
        grid=(pl.cdiv(n, tn),),
        in_specs=[pl.BlockSpec((tn, f_in), row),
                  pl.BlockSpec((f_in, hd), full),
                  pl.BlockSpec((hd, nh), full),
                  pl.BlockSpec((hd, nh), full)],
        out_specs=(pl.BlockSpec((tn, hd), row),
                   pl.BlockSpec((tn, nh), row),
                   pl.BlockSpec((tn, nh), row)),
        compiler_params=pltpu.CompilerParams(
            dimension_semantics=("parallel",)),
    )(x, w, al_blk, ar_blk)


# ---------------------------------------------------------------------------
# Kernel 2: masked edge-softmax attention + aggregation, tiled over dst nodes.
# ---------------------------------------------------------------------------
def _gat_attn_kernel(adj_ref, hheads_ref, elt_ref, ert_ref, b_ref, out_ref, *,
                     num_heads, attn_slope, act_slope, apply_act):
    # adj_ref    : (T, N_src)    int8, dst-major (row = destination node)
    # hheads_ref : (H, N_src, D) bfloat16 projected features, head-major
    # elt_ref    : (H, N_src)    f32 source-side logits
    # ert_ref    : (H, T)        f32 destination-side logits (this dst tile)
    # b_ref      : (1, H*D)      f32 post-aggregation bias
    # out_ref    : (T, H*D)      f32
    adjf = adj_ref[...].astype(jnp.float32)                         # (T, N_src)
    bias = jnp.where(adjf > 0, jnp.float32(0.0), jnp.float32(-1e30))

    el = elt_ref[...]                                               # (H, N_src)
    er = ert_ref[...]                                               # (H, T)

    # Scores for all heads in one shot: s[h, t, u] = el[h, u] + er[h, t].
    s = el[:, None, :] + er[:, :, None]                             # (H, T, N_src)
    s = jnp.where(s >= 0, s, attn_slope * s)                        # LeakyReLU(0.2)
    s = s + bias[None, :, :]                                        # mask non-edges

    # Edge softmax along the lane axis (sources), normalization deferred.
    m = jnp.max(s, axis=-1, keepdims=True)                          # (H, T, 1)
    p = jnp.exp(s - m)                                              # masked -> 0
    denom = jnp.sum(p, axis=-1, keepdims=True)                      # >= 1 w/ self-loops
    inv = pl.reciprocal(denom, approx=True)                         # EUP, ~free

    # Single batched MXU matmul over heads, bf16 inputs / f32 accumulation.
    o = jnp.einsum('htu,hud->htd', p.astype(jnp.bfloat16), hheads_ref[...],
                   preferred_element_type=jnp.float32)              # (H, T, D)
    o = o * inv

    # Assemble all heads -> one (T, H*D) store (flatten(1) in the module).
    out = jnp.concatenate([o[hd] for hd in range(num_heads)], axis=-1)
    out = out + b_ref[...]                                          # GATConv bias
    if apply_act:                                                   # F.leaky_relu
        out = jnp.where(out >= 0, out, act_slope * out)
    out_ref[...] = out


def _pick_tile_dst(n_dst, n_src, num_heads, out_feats,
                   budget_bytes=40 * 1024 * 1024, max_tile=1024):
    """Size the dst tile so the working set fits a conservative VMEM budget
    (sized for v7x's 64 MiB; also valid on v5e/v6e)."""
    # Resident once per call: bf16 head-major features + f32 source logits.
    resident = num_heads * n_src * (out_feats * 2 + 4)
    # Per destination row: double-buffered int8 adj + ~3 live f32 (H, ., N_src)
    # score/exp temporaries + dst logits + double-buffered f32 output row.
    per_row = n_src * (2 + 12 * num_heads) + 8 * num_heads * (out_feats + 1)
    avail = max(budget_bytes - resident, per_row * 128)
    tile = min(max(avail // per_row, 128), max_tile)
    if tile >= n_dst:
        return n_dst
    return max(128, (tile // 128) * 128)   # keep BlockSpec lane/sublane rules


def _gat_attention(adj_t_i8, h, el, er, b, *, num_heads, out_feats, apply_act,
                   tile_dst=None):
    n_dst, n_src = adj_t_i8.shape
    hd = num_heads * out_feats
    if tile_dst is None:
        tile_dst = _pick_tile_dst(n_dst, n_src, num_heads, out_feats)
    t = n_dst if n_dst <= tile_dst else tile_dst

    # Layout plumbing outside the kernel (cheap XLA ops):
    #   head-major bf16 features for the batched MXU matmul, transposed logits.
    h_heads = jnp.transpose(h.reshape(n_src, num_heads, out_feats),
                            (1, 0, 2)).astype(jnp.bfloat16)         # (H, N_src, D)
    el_t = el.T                                                     # (H, N_src)
    er_t = er.T                                                     # (H, N_dst)

    kernel = functools.partial(
        _gat_attn_kernel, num_heads=num_heads,
        attn_slope=0.2, act_slope=0.01, apply_act=apply_act)

    return pl.pallas_call(
        kernel,
        out_shape=jax.ShapeDtypeStruct((n_dst, hd), jnp.float32),
        grid=(pl.cdiv(n_dst, t),),
        in_specs=[pl.BlockSpec((t, n_src), lambda i: (i, 0)),               # adj tile
                  pl.BlockSpec((num_heads, n_src, out_feats),
                               lambda i: (0, 0, 0)),                        # resident
                  pl.BlockSpec((num_heads, n_src), lambda i: (0, 0)),       # resident
                  pl.BlockSpec((num_heads, t), lambda i: (0, i)),           # dst tile
                  pl.BlockSpec((1, hd), lambda i: (0, 0))],                 # bias
        out_specs=pl.BlockSpec((t, hd), lambda i: (i, 0)),
        compiler_params=pltpu.CompilerParams(
            dimension_semantics=("parallel",),          # shards across v7x's 2 TCs
            vmem_limit_bytes=48 * 1024 * 1024),
    )(adj_t_i8, h_heads, el_t, er_t, b)


# ---------------------------------------------------------------------------
# Parameters / layer / network drivers
# ---------------------------------------------------------------------------
def _block_diag_attn(attn):
    """(H, D) per-head attention vectors -> block-diagonal (H*D, H) matrix."""
    nh, d = attn.shape
    eye = jnp.eye(nh, dtype=attn.dtype)
    return (attn[:, :, None] * eye[:, None, :]).reshape(nh * d, nh)


def init_gat_params(key, node_input_dim, node_hidden_dim, num_layers, num_heads):
    assert node_hidden_dim % num_heads == 0
    out_feats = node_hidden_dim // num_heads
    params = []
    for i in range(num_layers):
        in_feats = node_input_dim if i == 0 else node_hidden_dim
        key, kw, kl, kr, kb = jax.random.split(key, 5)
        scale = (2.0 / (in_feats + num_heads * out_feats)) ** 0.5
        attn_l = jax.random.normal(kl, (num_heads, out_feats), jnp.float32)
        attn_r = jax.random.normal(kr, (num_heads, out_feats), jnp.float32)
        params.append({
            'w': scale * jax.random.normal(
                kw, (in_feats, num_heads * out_feats), jnp.float32),
            'b': 0.01 * jax.random.normal(
                kb, (1, num_heads * out_feats), jnp.float32),
            'attn_l': attn_l,
            'attn_r': attn_r,
            'al_blk': _block_diag_attn(attn_l),
            'ar_blk': _block_diag_attn(attn_r),
        })
    return params, out_feats


def gat_layer(x, adj_t_i8, p, *, num_heads, out_feats, apply_act, tile_dst):
    h, el, er = _project(x, p['w'], p['al_blk'], p['ar_blk'])
    return _gat_attention(adj_t_i8, h, el, er, p['b'],
                          num_heads=num_heads, out_feats=out_feats,
                          apply_act=apply_act, tile_dst=tile_dst)


def unsupervised_gat_forward(adj, n_feat, e_feat, params, *, num_heads,
                             out_feats, tile_dst=None):
    # e_feat is unused: DGL GATConv ignores edge features (matches reference).
    del e_feat
    # dst-major int8 adjacency (adj_t[v, u] = 1 iff edge u -> v), built once.
    adj_t_i8 = adj.T.astype(jnp.int8)
    num_layers = len(params)
    x = n_feat
    for i, p in enumerate(params):
        x = gat_layer(x, adj_t_i8, p, num_heads=num_heads, out_feats=out_feats,
                      apply_act=(i + 1 < num_layers), tile_dst=tile_dst)
    return x


def reference_forward(adj, n_feat, params, *, num_heads, out_feats):
    """Pure-JAX f32 reference with the module's math, for a correctness check."""
    num_layers = len(params)
    x = n_feat
    for i, p in enumerate(params):
        h = x @ p['w']
        outs = []
        for hd in range(num_heads):
            hh = h[:, hd * out_feats:(hd + 1) * out_feats]
            el = jnp.sum(hh * p['attn_l'][hd], axis=1, keepdims=True)
            er = jnp.sum(hh * p['attn_r'][hd], axis=1, keepdims=True)
            s = el + er.T                               # (src, dst)
            s = jnp.where(s >= 0, s, 0.2 * s)
            s = jnp.where(adj > 0, s, -1e30)
            m = jnp.max(s, axis=0, keepdims=True)
            pexp = jnp.exp(s - m) * adj
            att = pexp / jnp.sum(pexp, axis=0, keepdims=True)
            outs.append(att.T @ hh)
        x = jnp.concatenate(outs, axis=1) + p['b']
        if i + 1 < num_layers:
            x = jnp.where(x >= 0, x, 0.01 * x)
    return x


if __name__ == "__main__":
    # Small, module-consistent shapes (exercises a 2-tile dst grid).
    N = 256                 # number of nodes in the batched graph
    node_input_dim = 16
    node_hidden_dim = 32
    edge_input_dim = 8      # unused by GATConv
    num_layers = 2
    num_heads = 4

    key = jax.random.PRNGKey(0)
    kp, kf, ka, ke = jax.random.split(key, 4)

    params, out_feats = init_gat_params(
        kp, node_input_dim, node_hidden_dim, num_layers, num_heads)

    n_feat = jax.random.normal(kf, (N, node_input_dim), jnp.float32)
    e_feat = jax.random.normal(ke, (N * 4, edge_input_dim), jnp.float32)  # unused

    # Random sparse-ish adjacency + self loops (guarantees in-degree >= 1).
    adj = (jax.random.uniform(ka, (N, N)) < 0.1).astype(jnp.float32)
    adj = jnp.maximum(adj, jnp.eye(N, dtype=jnp.float32))

    out = unsupervised_gat_forward(
        adj, n_feat, e_feat, params, num_heads=num_heads, out_feats=out_feats,
        tile_dst=128)
    out = jax.block_until_ready(out)

    ref = reference_forward(adj, n_feat, params,
                            num_heads=num_heads, out_feats=out_feats)
    assert out.shape == (N, node_hidden_dim)
    # bf16 aggregation matmul + approx reciprocal vs full-f32 reference.
    assert jnp.allclose(out, ref, rtol=5e-2, atol=5e-2), "mismatch vs reference"

    print("KERNEL_OK")
</pallas_src>

<mosaic_0001>
module attributes {stable_mosaic.version = 11 : i64} {
  func.func @_proj_kernel(%arg0: i32, %arg1: memref<256x16xf32, #tpu.memory_space<vmem>>, %arg2: memref<16x32xf32, #tpu.memory_space<vmem>>, %arg3: memref<32x4xf32, #tpu.memory_space<vmem>>, %arg4: memref<32x4xf32, #tpu.memory_space<vmem>>, %arg5: memref<256x32xf32, #tpu.memory_space<vmem>>, %arg6: memref<256x4xf32, #tpu.memory_space<vmem>>, %arg7: memref<256x4xf32, #tpu.memory_space<vmem>>) attributes {dimension_semantics = [#tpu.dimension_semantics<parallel>], iteration_bounds = array<i64: 1>, scalar_prefetch = 0 : i64, scratch_operands = 0 : i64, tpu.core_type = #tpu.core_type<tc>, window_params = [{transform_indices = @transform_0, window_bounds = array<i64: 256, 16>}, {pipeline_mode = #tpu.pipeline_mode<synchronous>, transform_indices = @transform_1, window_bounds = array<i64: 16, 32>}, {pipeline_mode = #tpu.pipeline_mode<synchronous>, transform_indices = @transform_2, window_bounds = array<i64: 32, 4>}, {pipeline_mode = #tpu.pipeline_mode<synchronous>, transform_indices = @transform_3, window_bounds = array<i64: 32, 4>}, {transform_indices = @transform_4, window_bounds = array<i64: 256, 32>}, {transform_indices = @transform_5, window_bounds = array<i64: 256, 4>}, {transform_indices = @transform_6, window_bounds = array<i64: 256, 4>}]} {
    %c0 = arith.constant 0 : index
    %c0_0 = arith.constant 0 : index
    %0 = vector.load %arg1[%c0, %c0_0] : memref<256x16xf32, #tpu.memory_space<vmem>>, vector<256x16xf32>
    %c0_1 = arith.constant 0 : index
    %c0_2 = arith.constant 0 : index
    %1 = vector.load %arg2[%c0_1, %c0_2] : memref<16x32xf32, #tpu.memory_space<vmem>>, vector<16x32xf32>
    %cst = arith.constant dense<0.000000e+00> : vector<256x32xf32>
    %2 = tpu.matmul %0, %1, %cst {dimension_numbers = #tpu.dot_dimension_numbers<[1], [0], [0], [1], [0, 0, 1, 1], [], []>} : vector<256x16xf32>, vector<16x32xf32>, vector<256x32xf32> -> vector<256x32xf32>
    %c0_3 = arith.constant 0 : index
    %c0_4 = arith.constant 0 : index
    %3 = vector.load %arg5[%c0_3, %c0_4] : memref<256x32xf32, #tpu.memory_space<vmem>>, vector<256x32xf32>
    tpu.vector_store %arg5[%c0_3, %c0_4], %2 {strides = array<i32>} : memref<256x32xf32, #tpu.memory_space<vmem>>, vector<256x32xf32>,
    %c0_5 = arith.constant 0 : index
    %c0_6 = arith.constant 0 : index
    %4 = vector.load %arg3[%c0_5, %c0_6] : memref<32x4xf32, #tpu.memory_space<vmem>>, vector<32x4xf32>
    %cst_7 = arith.constant dense<0.000000e+00> : vector<256x4xf32>
    %5 = tpu.matmul %2, %4, %cst_7 {dimension_numbers = #tpu.dot_dimension_numbers<[1], [0], [0], [1], [0, 0, 1, 1], [], []>} : vector<256x32xf32>, vector<32x4xf32>, vector<256x4xf32> -> vector<256x4xf32>
    %c0_8 = arith.constant 0 : index
    %c0_9 = arith.constant 0 : index
    %6 = vector.load %arg6[%c0_8, %c0_9] : memref<256x4xf32, #tpu.memory_space<vmem>>, vector<256x4xf32>
    tpu.vector_store %arg6[%c0_8, %c0_9], %5 {strides = array<i32>} : memref<256x4xf32, #tpu.memory_space<vmem>>, vector<256x4xf32>,
    %c0_10 = arith.constant 0 : index
    %c0_11 = arith.constant 0 : index
    %7 = vector.load %arg4[%c0_10, %c0_11] : memref<32x4xf32, #tpu.memory_space<vmem>>, vector<32x4xf32>
    %cst_12 = arith.constant dense<0.000000e+00> : vector<256x4xf32>
    %8 = tpu.matmul %2, %7, %cst_12 {dimension_numbers = #tpu.dot_dimension_numbers<[1], [0], [0], [1], [0, 0, 1, 1], [], []>} : vector<256x32xf32>, vector<32x4xf32>, vector<256x4xf32> -> vector<256x4xf32>
    %c0_13 = arith.constant 0 : index
    %c0_14 = arith.constant 0 : index
    %9 = vector.load %arg7[%c0_13, %c0_14] : memref<256x4xf32, #tpu.memory_space<vmem>>, vector<256x4xf32>
    tpu.vector_store %arg7[%c0_13, %c0_14], %8 {strides = array<i32>} : memref<256x4xf32, #tpu.memory_space<vmem>>, vector<256x4xf32>,
    return
  }
  func.func @transform_0(%arg0: i32) -> (i32, i32) {
    %c0_i32 = arith.constant 0 : i32
    %c0_i32_0 = arith.constant 0 : i32
    return %arg0, %c0_i32 : i32, i32
  }
  func.func @transform_1(%arg0: i32) -> (i32, i32) {
    %c0_i32 = arith.constant 0 : i32
    %c0_i32_0 = arith.constant 0 : i32
    %c0_i32_1 = arith.constant 0 : i32
    return %c0_i32, %c0_i32_0 : i32, i32
  }
  func.func @transform_2(%arg0: i32) -> (i32, i32) {
    %c0_i32 = arith.constant 0 : i32
    %c0_i32_0 = arith.constant 0 : i32
    %c0_i32_1 = arith.constant 0 : i32
    return %c0_i32, %c0_i32_0 : i32, i32
  }
  func.func @transform_3(%arg0: i32) -> (i32, i32) {
    %c0_i32 = arith.constant 0 : i32
    %c0_i32_0 = arith.constant 0 : i32
    %c0_i32_1 = arith.constant 0 : i32
    return %c0_i32, %c0_i32_0 : i32, i32
  }
  func.func @transform_4(%arg0: i32) -> (i32, i32) {
    %c0_i32 = arith.constant 0 : i32
    %c0_i32_0 = arith.constant 0 : i32
    return %arg0, %c0_i32 : i32, i32
  }
  func.func @transform_5(%arg0: i32) -> (i32, i32) {
    %c0_i32 = arith.constant 0 : i32
    %c0_i32_0 = arith.constant 0 : i32
    return %arg0, %c0_i32 : i32, i32
  }
  func.func @transform_6(%arg0: i32) -> (i32, i32) {
    %c0_i32 = arith.constant 0 : i32
    %c0_i32_0 = arith.constant 0 : i32
    return %arg0, %c0_i32 : i32, i32
  }
}

</mosaic_0001>

<bundles_post_ra>
// kernel: tpu_custom_call.1
= control target key start
LH: loop header
LB: loop body
LE: loop exit
PB: predicated region body
PF: predicated region fallthrough
CT: control target
= control target key end

     0   :  { %vm54_vm0 = vcmask 130048   ;;  %vm376_vm1 = vcmask 261120   ;;  %vm734_vm2 = vcmask 31744   ;;  %s2114_s1 = inlined_call_operand.vmem [shape: f32[16,32], index: 1, kind: input, shape index: {}]   ;;  %s2115_s0 = inlined_call_operand.vmem [shape: f32[256,16], index: 0, kind: input, shape index: {}]   ;;  %s2116_s2 = inlined_call_operand.vmem [shape: f32[32,4], index: 2, kind: input, shape index: {}]   ;;  %s2117_s3 = inlined_call_operand.vmem [shape: f32[32,4], index: 3, kind: input, shape index: {}]   ;;  %s2118_s4 = inlined_call_operand.vmem [shape: f32[256,32], index: 4, kind: output, shape index: {0}]   ;;  %s2119_s5 = inlined_call_operand.vmem [shape: f32[256,4], index: 5, kind: output, shape index: {1}]   ;;  %s2120_s6 = inlined_call_operand.vmem [shape: f32[256,4], index: 6, kind: output, shape index: {2}]  }
   0x1   :  { %v52_v0 = vld [vmem:[%s2114_s1] sm:$0xff]  ;;  %v53_v1 = vld [vmem:[%s2114_s1 + $0x8] sm:$0xff]  ;;  %v22_v5 = vld [vmem:[%s2115_s0 + $0x10] sm:$0xff] }
   0x2   :  { %v20_v2 = vld [vmem:[%s2115_s0] sm:$0xff]  ;;  %v1406_v3 = vpack.c.bf16 %v53_v1, %v52_v0  ;;  %v21_v4 = vld [vmem:[%s2115_s0 + $0x8] sm:$0xff]  ;;  %v38_v8 = vld [vmem:[%s2115_s0 + $0x90] sm:$0xff] }
   0x3   :  { %1246 = vmatprep.mubr.msk.f32.mxu0 %vm54_vm0, %v20_v2  ;;  %v36_v6 = vld [vmem:[%s2115_s0 + $0x80] sm:$0xff]  ;;  %v37_v7 = vld [vmem:[%s2115_s0 + $0x88] sm:$0xff]  ;;  %v23_v9 = vld [vmem:[%s2115_s0 + $0x18] sm:$0xff] }
   0x4   :  { %1407 = vmatprep.subr.bf16.mxu0 %v1406_v3  ;;  %1426 = vmatprep.subr.bf16.mxu1 %v1406_v3  ;;  %v24_v10 = vld [vmem:[%s2115_s0 + $0x20] sm:$0xff]  ;;  %v39_v11 = vld [vmem:[%s2115_s0 + $0x98] sm:$0xff]  ;;  %v25_v12 = vld [vmem:[%s2115_s0 + $0x28] sm:$0xff] }
   0x5   :  { %1409 = vmatpush3.bf16.msra.mxu0 %v1406_v3  ;;  %1427 = vmatpush3.bf16.msra.mxu1 %v1406_v3  ;;  %v40_v13 = vld [vmem:[%s2115_s0 + $0xa0] sm:$0xff]  ;;  %v26_v14 = vld [vmem:[%s2115_s0 + $0x30] sm:$0xff]  ;;  %v41_v15 = vld [vmem:[%s2115_s0 + $0xa8] sm:$0xff] }
   0x6   :  { %1270 = vmatprep.mubr.msk.f32.mxu1 %vm54_vm0, %v36_v6  ;;  %v409_v16 = vld [vmem:[%s2116_s2] sm:$0xff]  ;;  %v410_v17 = vld [vmem:[%s2116_s2 + $0x8] sm:$0xff]  ;;  %v411_v21 = vld [vmem:[%s2116_s2 + $0x10] sm:$0xff] }
   0x7   :  { %v1410_v18 = vpack.c.bf16 %v410_v17, %v409_v16  ;;  %v767_v19 = vld [vmem:[%s2117_s3] sm:$0xff]  ;;  %v768_v20 = vld [vmem:[%s2117_s3 + $0x8] sm:$0xff]  ;;  %v412_v23 = vld [vmem:[%s2116_s2 + $0x18] sm:$0xff] }
   0x8   :  { %1247 = vmatmul.mubr.msk.f32.vlgmr.msra.gmra.mrb[0].mxu0 %vm54_vm0, %v21_v4  ;;  %1271 = vmatmul.mubr.msk.f32.vlgmr.msra.gmra.mrb[0].mxu1 %vm54_vm0, %v37_v7  ;;  %v1418_v22 = vpack.c.bf16 %v768_v20, %v767_v19  ;;  %v769_v24 = vld [vmem:[%s2117_s3 + $0x10] sm:$0xff]  ;;  %v770_v25 = vld [vmem:[%s2117_s3 + $0x18] sm:$0xff]  ;;  %v1414_v27 = vpack.c.bf16 %v412_v23, %v411_v21  ;;  %v28_v30 = vld [vmem:[%s2115_s0 + $0x40] sm:$0xff] }
   0x9   :  { %1249 = vmatprep.mubr.msk.f32.mxu0 %vm54_vm0, %v22_v5  ;;  %1273 = vmatprep.mubr.msk.f32.mxu1 %vm54_vm0, %v38_v8  ;;  %v42_v26 = vld [vmem:[%s2115_s0 + $0xb0] sm:$0xff]  ;;  %v1422_v28 = vpack.c.bf16 %v770_v25, %v769_v24  ;;  %v27_v29 = vld [vmem:[%s2115_s0 + $0x38] sm:$0xff]  ;;  %v44_v32 = vld [vmem:[%s2115_s0 + $0xc0] sm:$0xff] }
   0xa   :  { %1411 = vmatprep.subr.bf16.mxu1 %v1410_v18  ;;  %1419 = vmatprep.subr.bf16.mxu0 %v1418_v22  ;;  %v43_v31 = vld [vmem:[%s2115_s0 + $0xb8] sm:$0xff]  ;;  %v29_v33 = vld [vmem:[%s2115_s0 + $0x48] sm:$0xff]  ;;  %v30_v34 = vld [vmem:[%s2115_s0 + $0x50] sm:$0xff] }
   0xb   :  { %1413 = vmatpush3.bf16.msra.mxu1 %v1410_v18  ;;  %1421 = vmatpush3.bf16.msra.mxu0 %v1418_v22  ;;  %v45_v35 = vld [vmem:[%s2115_s0 + $0xc8] sm:$0xff]  ;;  %v46_v36 = vld [vmem:[%s2115_s0 + $0xd0] sm:$0xff]  ;;  %v31_v37 = vld [vmem:[%s2115_s0 + $0x58] sm:$0xff] }
   0xc   :  { %1250 = vmatmul.mubr.msk.f32.gmra.mrb[2].mxu0 %vm54_vm0, %v23_v9  ;;  %1274 = vmatmul.mubr.msk.f32.gmra.mrb[2].mxu1 %vm54_vm0, %v39_v11  ;;  %v32_v38 = vld [vmem:[%s2115_s0 + $0x60] sm:$0xff]  ;;  %v47_v39 = vld [vmem:[%s2115_s0 + $0xd8] sm:$0xff]  ;;  %v33_v41 = vld [vmem:[%s2115_s0 + $0x68] sm:$0xff] }
   0xd   :  { %1252 = vmatprep.mubr.msk.f32.mxu0 %vm54_vm0, %v24_v10  ;;  %1276 = vmatprep.mubr.msk.f32.mxu1 %vm54_vm0, %v40_v13  ;;  %v48_v40 = vld [vmem:[%s2115_s0 + $0xe0] sm:$0xff]  ;;  %v34_v42 = vld [vmem:[%s2115_s0 + $0x70] sm:$0xff]  ;;  %v49_v43 = vld [vmem:[%s2115_s0 + $0xe8] sm:$0xff] }
   0xe   :  { %1415 = vmatprep.subr.bf16.mxu1 %v1414_v27  ;;  %1423 = vmatprep.subr.bf16.mxu0 %v1422_v28  ;;  %v50_v44 = vld [vmem:[%s2115_s0 + $0xf0] sm:$0xff]  ;;  %v35_v45 = vld [vmem:[%s2115_s0 + $0x78] sm:$0xff] }
   0xf   :  { %1417 = vmatpush3.bf16.msra.mxu1 %v1414_v27  ;;  %1425 = vmatpush3.bf16.msra.mxu0 %v1422_v28  ;;  %v51_v46 = vld [vmem:[%s2115_s0 + $0xf8] sm:$0xff] }
  0x10   :  { %1253 = vmatmul.mubr.msk.f32.gmra.mrb[4].mxu0 %vm54_vm0, %v25_v12  ;;  %1277 = vmatmul.mubr.msk.f32.gmra.mrb[4].mxu1 %vm54_vm0, %v41_v15 }
  0x11   :  { %1255 = vmatprep.mubr.msk.f32.mxu0 %vm54_vm0, %v26_v14  ;;  %1279 = vmatprep.mubr.msk.f32.mxu1 %vm54_vm0, %v42_v26 }
  0x14   :  { %1256 = vmatmul.mubr.msk.f32.gmra.mrb[6].mxu0 %vm54_vm0, %v27_v29  ;;  %1280 = vmatmul.mubr.msk.f32.gmra.mrb[6].mxu1 %vm54_vm0, %v43_v31 }
  0x15   :  { %1258 = vmatprep.mubr.msk.f32.mxu0 %vm54_vm0, %v28_v30  ;;  %1282 = vmatprep.mubr.msk.f32.mxu1 %vm54_vm0, %v44_v32 }
  0x18   :  { %1259 = vmatmul.mubr.msk.f32.gmra.mrb[8].mxu0 %vm54_vm0, %v29_v33  ;;  %1283 = vmatmul.mubr.msk.f32.gmra.mrb[8].mxu1 %vm54_vm0, %v45_v35 }
  0x19   :  { %1261 = vmatprep.mubr.msk.f32.mxu0 %vm54_vm0, %v30_v34  ;;  %1285 = vmatprep.mubr.msk.f32.mxu1 %vm54_vm0, %v46_v36 }
  0x1c   :  { %1262 = vmatmul.mubr.msk.f32.gmra.mrb[10].mxu0 %vm54_vm0, %v31_v37  ;;  %1286 = vmatmul.mubr.msk.f32.gmra.mrb[10].mxu1 %vm54_vm0, %v47_v39 }
  0x1d   :  { %1264 = vmatprep.mubr.msk.f32.mxu0 %vm54_vm0, %v32_v38  ;;  %1288 = vmatprep.mubr.msk.f32.mxu1 %vm54_vm0, %v48_v40 }
  0x20   :  { %1265 = vmatmul.mubr.msk.f32.gmra.mrb[12].mxu0 %vm54_vm0, %v33_v41  ;;  %1289 = vmatmul.mubr.msk.f32.gmra.mrb[12].mxu1 %vm54_vm0, %v49_v43 }
  0x21   :  { %1267 = vmatprep.mubr.msk.f32.mxu0 %vm54_vm0, %v34_v42  ;;  %1291 = vmatprep.mubr.msk.f32.mxu1 %vm54_vm0, %v50_v44 }
  0x24   :  { %1268 = vmatmul.mubr.msk.f32.gmra.mrb[14].mxu0 %vm54_vm0, %v35_v45  ;;  %1292 = vmatmul.mubr.msk.f32.gmra.mrb[14].mxu1 %vm54_vm0, %v51_v46 }
  0xdb   :  { %v1248_v47 = vpop.f32.mrb[0].mxu0  ;;  %v1625_v49 = vpop.f32.mrb[0].mxu1 }
  0xdc   :  { %378 = vst.msk [vmem:[%s2118_s4 + $0x8] sm:$0xff] %vm376_vm1, %v1248_v47  ;;  %v217_v48 = vpop.f32.mrb[1].mxu0  ;;  %394 = vst.msk [vmem:[%s2118_s4 + $0x88] sm:$0xff] %vm376_vm1, %v1625_v49  ;;  %v1638_v50 = vpop.f32.mrb[1].mxu1 }
  0xdd   :  { %377 = vst.msk [vmem:[%s2118_s4] sm:$0xff] %vm376_vm1, %v217_v48  ;;  %1302 = vmatprep.mubr.msk.f32.mxu1 %vm376_vm1, %v217_v48  ;;  %1358 = vmatprep.mubr.msk.f32.mxu0 %vm376_vm1, %v217_v48  ;;  %393 = vst.msk [vmem:[%s2118_s4 + $0x80] sm:$0xff] %vm376_vm1, %v1638_v50 }
  0xde   :  { %1303 = vmatmul.mubr.msk.f32.vlgmr.msra.gmra.mrb[16].mxu1 %vm376_vm1, %v1248_v47  ;;  %1359 = vmatmul.mubr.msk.f32.vlgmr.msra.gmra.mrb[16].mxu0 %vm376_vm1, %v1248_v47 }
  0xdf   :  { %v1251_v51 = vpop.f32.mrb[2].mxu0  ;;  %v1651_v53 = vpop.f32.mrb[2].mxu1 }
  0xe0   :  { %380 = vst.msk [vmem:[%s2118_s4 + $0x18] sm:$0xff] %vm376_vm1, %v1251_v51  ;;  %v227_v52 = vpop.f32.mrb[3].mxu0  ;;  %396 = vst.msk [vmem:[%s2118_s4 + $0x98] sm:$0xff] %vm376_vm1, %v1651_v53  ;;  %v1664_v54 = vpop.f32.mrb[3].mxu1 }
  0xe1   :  { %379 = vst.msk [vmem:[%s2118_s4 + $0x10] sm:$0xff] %vm376_vm1, %v227_v52  ;;  %1305 = vmatprep.mubr.msk.f32.mxu1 %vm376_vm1, %v227_v52  ;;  %1361 = vmatprep.mubr.msk.f32.mxu0 %vm376_vm1, %v227_v52  ;;  %395 = vst.msk [vmem:[%s2118_s4 + $0x90] sm:$0xff] %vm376_vm1, %v1664_v54 }
  0xe2   :  { %1306 = vmatmul.mubr.msk.f32.gmra.mrb[18].mxu1 %vm376_vm1, %v1251_v51  ;;  %1362 = vmatmul.mubr.msk.f32.gmra.mrb[18].mxu0 %vm376_vm1, %v1251_v51 }
  0xe3   :  { %v1254_v55 = vpop.f32.mrb[4].mxu0  ;;  %v1677_v57 = vpop.f32.mrb[4].mxu1 }
  0xe4   :  { %382 = vst.msk [vmem:[%s2118_s4 + $0x28] sm:$0xff] %vm376_vm1, %v1254_v55  ;;  %v237_v56 = vpop.f32.mrb[5].mxu0  ;;  %398 = vst.msk [vmem:[%s2118_s4 + $0xa8] sm:$0xff] %vm376_vm1, %v1677_v57  ;;  %v1690_v58 = vpop.f32.mrb[5].mxu1 }
  0xe5   :  { %381 = vst.msk [vmem:[%s2118_s4 + $0x20] sm:$0xff] %vm376_vm1, %v237_v56  ;;  %1308 = vmatprep.mubr.msk.f32.mxu1 %vm376_vm1, %v237_v56  ;;  %1364 = vmatprep.mubr.msk.f32.mxu0 %vm376_vm1, %v237_v56  ;;  %397 = vst.msk [vmem:[%s2118_s4 + $0xa0] sm:$0xff] %vm376_vm1, %v1690_v58 }
  0xe6   :  { %1309 = vmatmul.mubr.msk.f32.gmra.mrb[20].mxu1 %vm376_vm1, %v1254_v55  ;;  %1365 = vmatmul.mubr.msk.f32.gmra.mrb[20].mxu0 %vm376_vm1, %v1254_v55 }
  0xe7   :  { %v1257_v59 = vpop.f32.mrb[6].mxu0  ;;  %v1703_v61 = vpop.f32.mrb[6].mxu1 }
  0xe8   :  { %384 = vst.msk [vmem:[%s2118_s4 + $0x38] sm:$0xff] %vm376_vm1, %v1257_v59  ;;  %v247_v60 = vpop.f32.mrb[7].mxu0  ;;  %400 = vst.msk [vmem:[%s2118_s4 + $0xb8] sm:$0xff] %vm376_vm1, %v1703_v61  ;;  %v1716_v62 = vpop.f32.mrb[7].mxu1 }
  0xe9   :  { %383 = vst.msk [vmem:[%s2118_s4 + $0x30] sm:$0xff] %vm376_vm1, %v247_v60  ;;  %1311 = vmatprep.mubr.msk.f32.mxu1 %vm376_vm1, %v247_v60  ;;  %1367 = vmatprep.mubr.msk.f32.mxu0 %vm376_vm1, %v247_v60  ;;  %399 = vst.msk [vmem:[%s2118_s4 + $0xb0] sm:$0xff] %vm376_vm1, %v1716_v62 }
  0xea   :  { %1312 = vmatmul.mubr.msk.f32.gmra.mrb[22].mxu1 %vm376_vm1, %v1257_v59  ;;  %1368 = vmatmul.mubr.msk.f32.gmra.mrb[22].mxu0 %vm376_vm1, %v1257_v59 }
  0xeb   :  { %v1260_v63 = vpop.f32.mrb[8].mxu0  ;;  %v1729_v1 = vpop.f32.mrb[8].mxu1 }
  0xec   :  { %386 = vst.msk [vmem:[%s2118_s4 + $0x48] sm:$0xff] %vm376_vm1, %v1260_v63  ;;  %v257_v0 = vpop.f32.mrb[9].mxu0  ;;  %402 = vst.msk [vmem:[%s2118_s4 + $0xc8] sm:$0xff] %vm376_vm1, %v1729_v1  ;;  %v337_v2 = vpop.f32.mrb[9].mxu1 }
  0xed   :  { %385 = vst.msk [vmem:[%s2118_s4 + $0x40] sm:$0xff] %vm376_vm1, %v257_v0  ;;  %1314 = vmatprep.mubr.msk.f32.mxu1 %vm376_vm1, %v257_v0  ;;  %1370 = vmatprep.mubr.msk.f32.mxu0 %vm376_vm1, %v257_v0  ;;  %401 = vst.msk [vmem:[%s2118_s4 + $0xc0] sm:$0xff] %vm376_vm1, %v337_v2 }
  0xee   :  { %1315 = vmatmul.mubr.msk.f32.gmra.mrb[24].mxu1 %vm376_vm1, %v1260_v63  ;;  %1371 = vmatmul.mubr.msk.f32.gmra.mrb[24].mxu0 %vm376_vm1, %v1260_v63 }
  0xef   :  { %v1263_v3 = vpop.f32.mrb[10].mxu0  ;;  %v1287_v5 = vpop.f32.mrb[10].mxu1 }
  0xf0   :  { %388 = vst.msk [vmem:[%s2118_s4 + $0x58] sm:$0xff] %vm376_vm1, %v1263_v3  ;;  %v267_v4 = vpop.f32.mrb[11].mxu0  ;;  %404 = vst.msk [vmem:[%s2118_s4 + $0xd8] sm:$0xff] %vm376_vm1, %v1287_v5  ;;  %v347_v6 = vpop.f32.mrb[11].mxu1 }
  0xf1   :  { %387 = vst.msk [vmem:[%s2118_s4 + $0x50] sm:$0xff] %vm376_vm1, %v267_v4  ;;  %1317 = vmatprep.mubr.msk.f32.mxu1 %vm376_vm1, %v267_v4  ;;  %1373 = vmatprep.mubr.msk.f32.mxu0 %vm376_vm1, %v267_v4  ;;  %403 = vst.msk [vmem:[%s2118_s4 + $0xd0] sm:$0xff] %vm376_vm1, %v347_v6 }
  0xf2   :  { %1318 = vmatmul.mubr.msk.f32.gmra.mrb[26].mxu1 %vm376_vm1, %v1263_v3  ;;  %1374 = vmatmul.mubr.msk.f32.gmra.mrb[26].mxu0 %vm376_vm1, %v1263_v3 }
  0xf3   :  { %v1266_v7 = vpop.f32.mrb[12].mxu0  ;;  %v1290_v9 = vpop.f32.mrb[12].mxu1 }
  0xf4   :  { %390 = vst.msk [vmem:[%s2118_s4 + $0x68] sm:$0xff] %vm376_vm1, %v1266_v7  ;;  %v277_v8 = vpop.f32.mrb[13].mxu0  ;;  %406 = vst.msk [vmem:[%s2118_s4 + $0xe8] sm:$0xff] %vm376_vm1, %v1290_v9  ;;  %v357_v10 = vpop.f32.mrb[13].mxu1 }
  0xf5   :  { %389 = vst.msk [vmem:[%s2118_s4 + $0x60] sm:$0xff] %vm376_vm1, %v277_v8  ;;  %1320 = vmatprep.mubr.msk.f32.mxu1 %vm376_vm1, %v277_v8  ;;  %1376 = vmatprep.mubr.msk.f32.mxu0 %vm376_vm1, %v277_v8  ;;  %405 = vst.msk [vmem:[%s2118_s4 + $0xe0] sm:$0xff] %vm376_vm1, %v357_v10 }
  0xf6   :  { %1321 = vmatmul.mubr.msk.f32.gmra.mrb[28].mxu1 %vm376_vm1, %v1266_v7  ;;  %1377 = vmatmul.mubr.msk.f32.gmra.mrb[28].mxu0 %vm376_vm1, %v1266_v7 }
  0xf7   :  { %v1269_v11 = vpop.f32.mrb[14].mxu0  ;;  %v1293_v13 = vpop.f32.mrb[14].mxu1 }
  0xf8   :  { %392 = vst.msk [vmem:[%s2118_s4 + $0x78] sm:$0xff] %vm376_vm1, %v1269_v11  ;;  %v287_v12 = vpop.f32.mrb[15].mxu0  ;;  %408 = vst.msk [vmem:[%s2118_s4 + $0xf8] sm:$0xff] %vm376_vm1, %v1293_v13  ;;  %v367_v14 = vpop.f32.mrb[15].mxu1 }
  0xf9   :  { %391 = vst.msk [vmem:[%s2118_s4 + $0x70] sm:$0xff] %vm376_vm1, %v287_v12  ;;  %1323 = vmatprep.mubr.msk.f32.mxu1 %vm376_vm1, %v287_v12  ;;  %1379 = vmatprep.mubr.msk.f32.mxu0 %vm376_vm1, %v287_v12  ;;  %407 = vst.msk [vmem:[%s2118_s4 + $0xf0] sm:$0xff] %vm376_vm1, %v367_v14 }
  0xfa   :  { %1324 = vmatmul.mubr.msk.f32.gmra.mrb[30].mxu1 %vm376_vm1, %v1269_v11  ;;  %1380 = vmatmul.mubr.msk.f32.gmra.mrb[30].mxu0 %vm376_vm1, %v1269_v11 }
  0xfb   :  { %1326 = vmatprep.mubr.msk.f32.mxu1 %vm376_vm1, %v1638_v50  ;;  %1382 = vmatprep.mubr.msk.f32.mxu0 %vm376_vm1, %v1638_v50 }
  0xfe   :  { %1327 = vmatmul.mubr.msk.f32.gmra.mrb[32].mxu1 %vm376_vm1, %v1625_v49  ;;  %1383 = vmatmul.mubr.msk.f32.gmra.mrb[32].mxu0 %vm376_vm1, %v1625_v49 }
  0xff   :  { %1329 = vmatprep.mubr.msk.f32.mxu1 %vm376_vm1, %v1664_v54  ;;  %1385 = vmatprep.mubr.msk.f32.mxu0 %vm376_vm1, %v1664_v54 }
 0x102   :  { %1330 = vmatmul.mubr.msk.f32.gmra.mrb[34].mxu1 %vm376_vm1, %v1651_v53  ;;  %1386 = vmatmul.mubr.msk.f32.gmra.mrb[34].mxu0 %vm376_vm1, %v1651_v53 }
 0x103   :  { %1332 = vmatprep.mubr.msk.f32.mxu1 %vm376_vm1, %v1690_v58  ;;  %1388 = vmatprep.mubr.msk.f32.mxu0 %vm376_vm1, %v1690_v58 }
 0x106   :  { %1333 = vmatmul.mubr.msk.f32.gmra.mrb[36].mxu1 %vm376_vm1, %v1677_v57  ;;  %1389 = vmatmul.mubr.msk.f32.gmra.mrb[36].mxu0 %vm376_vm1, %v1677_v57 }
 0x107   :  { %1335 = vmatprep.mubr.msk.f32.mxu1 %vm376_vm1, %v1716_v62  ;;  %1391 = vmatprep.mubr.msk.f32.mxu0 %vm376_vm1, %v1716_v62 }
 0x10a   :  { %1336 = vmatmul.mubr.msk.f32.gmra.mrb[38].mxu1 %vm376_vm1, %v1703_v61  ;;  %1392 = vmatmul.mubr.msk.f32.gmra.mrb[38].mxu0 %vm376_vm1, %v1703_v61 }
 0x10b   :  { %1338 = vmatprep.mubr.msk.f32.mxu1 %vm376_vm1, %v337_v2  ;;  %1394 = vmatprep.mubr.msk.f32.mxu0 %vm376_vm1, %v337_v2 }
 0x10e   :  { %1339 = vmatmul.mubr.msk.f32.gmra.mrb[40].mxu1 %vm376_vm1, %v1729_v1  ;;  %1395 = vmatmul.mubr.msk.f32.gmra.mrb[40].mxu0 %vm376_vm1, %v1729_v1 }
 0x10f   :  { %1341 = vmatprep.mubr.msk.f32.mxu1 %vm376_vm1, %v347_v6  ;;  %1397 = vmatprep.mubr.msk.f32.mxu0 %vm376_vm1, %v347_v6 }
 0x112   :  { %1342 = vmatmul.mubr.msk.f32.gmra.mrb[42].mxu1 %vm376_vm1, %v1287_v5  ;;  %1398 = vmatmul.mubr.msk.f32.gmra.mrb[42].mxu0 %vm376_vm1, %v1287_v5 }
 0x113   :  { %1344 = vmatprep.mubr.msk.f32.mxu1 %vm376_vm1, %v357_v10  ;;  %1400 = vmatprep.mubr.msk.f32.mxu0 %vm376_vm1, %v357_v10 }
 0x116   :  { %1345 = vmatmul.mubr.msk.f32.gmra.mrb[44].mxu1 %vm376_vm1, %v1290_v9  ;;  %1401 = vmatmul.mubr.msk.f32.gmra.mrb[44].mxu0 %vm376_vm1, %v1290_v9 }
 0x117   :  { %1347 = vmatprep.mubr.msk.f32.mxu1 %vm376_vm1, %v367_v14  ;;  %1403 = vmatprep.mubr.msk.f32.mxu0 %vm376_vm1, %v367_v14 }
 0x11a   :  { %1348 = vmatmul.mubr.msk.f32.gmra.mrb[46].mxu1 %vm376_vm1, %v1293_v13  ;;  %1404 = vmatmul.mubr.msk.f32.gmra.mrb[46].mxu0 %vm376_vm1, %v1293_v13 }
 0x1b1   :  { %v1304_v15 = vpop.f32.mrb[16].mxu1  ;;  %v1360_v16 = vpop.f32.mrb[16].mxu0 }
 0x1b2   :  { %736 = vst.msk [vmem:[%s2119_s5 + $0x8] sm:$0xff] %vm734_vm2, %v1304_v15  ;;  %997 = vst.msk [vmem:[%s2120_s6 + $0x8] sm:$0xff] %vm734_vm2, %v1360_v16  ;;  %v575_v17 = vpop.f32.mrb[17].mxu1  ;;  %v837_v18 = vpop.f32.mrb[17].mxu0 }
 0x1b3   :  { %735 = vst.msk [vmem:[%s2119_s5] sm:$0xff] %vm734_vm2, %v575_v17  ;;  %996 = vst.msk [vmem:[%s2120_s6] sm:$0xff] %vm734_vm2, %v837_v18 }
 0x1b5   :  { %v1307_v19 = vpop.f32.mrb[18].mxu1  ;;  %v1363_v20 = vpop.f32.mrb[18].mxu0 }
 0x1b6   :  { %738 = vst.msk [vmem:[%s2119_s5 + $0x18] sm:$0xff] %vm734_vm2, %v1307_v19  ;;  %999 = vst.msk [vmem:[%s2120_s6 + $0x18] sm:$0xff] %vm734_vm2, %v1363_v20  ;;  %v585_v21 = vpop.f32.mrb[19].mxu1  ;;  %v847_v22 = vpop.f32.mrb[19].mxu0 }
 0x1b7   :  { %737 = vst.msk [vmem:[%s2119_s5 + $0x10] sm:$0xff] %vm734_vm2, %v585_v21  ;;  %998 = vst.msk [vmem:[%s2120_s6 + $0x10] sm:$0xff] %vm734_vm2, %v847_v22 }
 0x1b9   :  { %v1310_v23 = vpop.f32.mrb[20].mxu1  ;;  %v1366_v24 = vpop.f32.mrb[20].mxu0 }
 0x1ba   :  { %740 = vst.msk [vmem:[%s2119_s5 + $0x28] sm:$0xff] %vm734_vm2, %v1310_v23  ;;  %1001 = vst.msk [vmem:[%s2120_s6 + $0x28] sm:$0xff] %vm734_vm2, %v1366_v24  ;;  %v595_v25 = vpop.f32.mrb[21].mxu1  ;;  %v857_v26 = vpop.f32.mrb[21].mxu0 }
 0x1bb   :  { %739 = vst.msk [vmem:[%s2119_s5 + $0x20] sm:$0xff] %vm734_vm2, %v595_v25  ;;  %1000 = vst.msk [vmem:[%s2120_s6 + $0x20] sm:$0xff] %vm734_vm2, %v857_v26 }
 0x1bd   :  { %v1313_v27 = vpop.f32.mrb[22].mxu1  ;;  %v1369_v28 = vpop.f32.mrb[22].mxu0 }
 0x1be   :  { %742 = vst.msk [vmem:[%s2119_s5 + $0x38] sm:$0xff] %vm734_vm2, %v1313_v27  ;;  %1003 = vst.msk [vmem:[%s2120_s6 + $0x38] sm:$0xff] %vm734_vm2, %v1369_v28  ;;  %v605_v29 = vpop.f32.mrb[23].mxu1  ;;  %v867_v30 = vpop.f32.mrb[23].mxu0 }
 0x1bf   :  { %741 = vst.msk [vmem:[%s2119_s5 + $0x30] sm:$0xff] %vm734_vm2, %v605_v29  ;;  %1002 = vst.msk [vmem:[%s2120_s6 + $0x30] sm:$0xff] %vm734_vm2, %v867_v30 }
 0x1c1   :  { %v1316_v31 = vpop.f32.mrb[24].mxu1  ;;  %v1372_v32 = vpop.f32.mrb[24].mxu0 }
 0x1c2   :  { %744 = vst.msk [vmem:[%s2119_s5 + $0x48] sm:$0xff] %vm734_vm2, %v1316_v31  ;;  %1005 = vst.msk [vmem:[%s2120_s6 + $0x48] sm:$0xff] %vm734_vm2, %v1372_v32  ;;  %v615_v33 = vpop.f32.mrb[25].mxu1  ;;  %v877_v34 = vpop.f32.mrb[25].mxu0 }
 0x1c3   :  { %743 = vst.msk [vmem:[%s2119_s5 + $0x40] sm:$0xff] %vm734_vm2, %v615_v33  ;;  %1004 = vst.msk [vmem:[%s2120_s6 + $0x40] sm:$0xff] %vm734_vm2, %v877_v34 }
 0x1c5   :  { %v1319_v35 = vpop.f32.mrb[26].mxu1  ;;  %v1375_v36 = vpop.f32.mrb[26].mxu0 }
 0x1c6   :  { %746 = vst.msk [vmem:[%s2119_s5 + $0x58] sm:$0xff] %vm734_vm2, %v1319_v35  ;;  %1007 = vst.msk [vmem:[%s2120_s6 + $0x58] sm:$0xff] %vm734_vm2, %v1375_v36  ;;  %v625_v37 = vpop.f32.mrb[27].mxu1  ;;  %v887_v38 = vpop.f32.mrb[27].mxu0 }
 0x1c7   :  { %745 = vst.msk [vmem:[%s2119_s5 + $0x50] sm:$0xff] %vm734_vm2, %v625_v37  ;;  %1006 = vst.msk [vmem:[%s2120_s6 + $0x50] sm:$0xff] %vm734_vm2, %v887_v38 }
 0x1c9   :  { %v1322_v39 = vpop.f32.mrb[28].mxu1  ;;  %v1378_v40 = vpop.f32.mrb[28].mxu0 }
 0x1ca   :  { %748 = vst.msk [vmem:[%s2119_s5 + $0x68] sm:$0xff] %vm734_vm2, %v1322_v39  ;;  %1009 = vst.msk [vmem:[%s2120_s6 + $0x68] sm:$0xff] %vm734_vm2, %v1378_v40  ;;  %v635_v41 = vpop.f32.mrb[29].mxu1  ;;  %v897_v42 = vpop.f32.mrb[29].mxu0 }
 0x1cb   :  { %747 = vst.msk [vmem:[%s2119_s5 + $0x60] sm:$0xff] %vm734_vm2, %v635_v41  ;;  %1008 = vst.msk [vmem:[%s2120_s6 + $0x60] sm:$0xff] %vm734_vm2, %v897_v42 }
 0x1cd   :  { %v1325_v43 = vpop.f32.mrb[30].mxu1  ;;  %v1381_v44 = vpop.f32.mrb[30].mxu0 }
 0x1ce   :  { %750 = vst.msk [vmem:[%s2119_s5 + $0x78] sm:$0xff] %vm734_vm2, %v1325_v43  ;;  %1011 = vst.msk [vmem:[%s2120_s6 + $0x78] sm:$0xff] %vm734_vm2, %v1381_v44  ;;  %v645_v45 = vpop.f32.mrb[31].mxu1  ;;  %v907_v46 = vpop.f32.mrb[31].mxu0 }
 0x1cf   :  { %749 = vst.msk [vmem:[%s2119_s5 + $0x70] sm:$0xff] %vm734_vm2, %v645_v45  ;;  %1010 = vst.msk [vmem:[%s2120_s6 + $0x70] sm:$0xff] %vm734_vm2, %v907_v46 }
 0x1d1   :  { %v1328_v47 = vpop.f32.mrb[32].mxu1  ;;  %v1384_v48 = vpop.f32.mrb[32].mxu0 }
 0x1d2   :  { %752 = vst.msk [vmem:[%s2119_s5 + $0x88] sm:$0xff] %vm734_vm2, %v1328_v47  ;;  %1013 = vst.msk [vmem:[%s2120_s6 + $0x88] sm:$0xff] %vm734_vm2, %v1384_v48  ;;  %v655_v49 = vpop.f32.mrb[33].mxu1  ;;  %v917_v50 = vpop.f32.mrb[33].mxu0 }
 0x1d3   :  { %751 = vst.msk [vmem:[%s2119_s5 + $0x80] sm:$0xff] %vm734_vm2, %v655_v49  ;;  %1012 = vst.msk [vmem:[%s2120_s6 + $0x80] sm:$0xff] %vm734_vm2, %v917_v50 }
 0x1d5   :  { %v1331_v51 = vpop.f32.mrb[34].mxu1  ;;  %v1387_v52 = vpop.f32.mrb[34].mxu0 }
 0x1d6   :  { %754 = vst.msk [vmem:[%s2119_s5 + $0x98] sm:$0xff] %vm734_vm2, %v1331_v51  ;;  %1015 = vst.msk [vmem:[%s2120_s6 + $0x98] sm:$0xff] %vm734_vm2, %v1387_v52  ;;  %v665_v53 = vpop.f32.mrb[35].mxu1  ;;  %v927_v54 = vpop.f32.mrb[35].mxu0 }
 0x1d7   :  { %753 = vst.msk [vmem:[%s2119_s5 + $0x90] sm:$0xff] %vm734_vm2, %v665_v53  ;;  %1014 = vst.msk [vmem:[%s2120_s6 + $0x90] sm:$0xff] %vm734_vm2, %v927_v54 }
 0x1d9   :  { %v1334_v55 = vpop.f32.mrb[36].mxu1  ;;  %v1390_v56 = vpop.f32.mrb[36].mxu0 }
 0x1da   :  { %756 = vst.msk [vmem:[%s2119_s5 + $0xa8] sm:$0xff] %vm734_vm2, %v1334_v55  ;;  %1017 = vst.msk [vmem:[%s2120_s6 + $0xa8] sm:$0xff] %vm734_vm2, %v1390_v56  ;;  %v675_v57 = vpop.f32.mrb[37].mxu1  ;;  %v937_v58 = vpop.f32.mrb[37].mxu0 }
 0x1db   :  { %755 = vst.msk [vmem:[%s2119_s5 + $0xa0] sm:$0xff] %vm734_vm2, %v675_v57  ;;  %1016 = vst.msk [vmem:[%s2120_s6 + $0xa0] sm:$0xff] %vm734_vm2, %v937_v58 }
 0x1dd   :  { %v1337_v59 = vpop.f32.mrb[38].mxu1  ;;  %v1393_v60 = vpop.f32.mrb[38].mxu0 }
 0x1de   :  { %758 = vst.msk [vmem:[%s2119_s5 + $0xb8] sm:$0xff] %vm734_vm2, %v1337_v59  ;;  %1019 = vst.msk [vmem:[%s2120_s6 + $0xb8] sm:$0xff] %vm734_vm2, %v1393_v60  ;;  %v685_v61 = vpop.f32.mrb[39].mxu1  ;;  %v947_v62 = vpop.f32.mrb[39].mxu0 }
 0x1df   :  { %757 = vst.msk [vmem:[%s2119_s5 + $0xb0] sm:$0xff] %vm734_vm2, %v685_v61  ;;  %1018 = vst.msk [vmem:[%s2120_s6 + $0xb0] sm:$0xff] %vm734_vm2, %v947_v62 }
 0x1e1   :  { %v1340_v63 = vpop.f32.mrb[40].mxu1  ;;  %v1396_v0 = vpop.f32.mrb[40].mxu0 }
 0x1e2   :  { %760 = vst.msk [vmem:[%s2119_s5 + $0xc8] sm:$0xff] %vm734_vm2, %v1340_v63  ;;  %1021 = vst.msk [vmem:[%s2120_s6 + $0xc8] sm:$0xff] %vm734_vm2, %v1396_v0  ;;  %v695_v1 = vpop.f32.mrb[41].mxu1  ;;  %v957_v2 = vpop.f32.mrb[41].mxu0 }
 0x1e3   :  { %759 = vst.msk [vmem:[%s2119_s5 + $0xc0] sm:$0xff] %vm734_vm2, %v695_v1  ;;  %1020 = vst.msk [vmem:[%s2120_s6 + $0xc0] sm:$0xff] %vm734_vm2, %v957_v2 }
 0x1e5   :  { %v1343_v3 = vpop.f32.mrb[42].mxu1  ;;  %v1399_v4 = vpop.f32.mrb[42].mxu0 }
 0x1e6   :  { %762 = vst.msk [vmem:[%s2119_s5 + $0xd8] sm:$0xff] %vm734_vm2, %v1343_v3  ;;  %1023 = vst.msk [vmem:[%s2120_s6 + $0xd8] sm:$0xff] %vm734_vm2, %v1399_v4  ;;  %v705_v5 = vpop.f32.mrb[43].mxu1  ;;  %v967_v6 = vpop.f32.mrb[43].mxu0 }
 0x1e7   :  { %761 = vst.msk [vmem:[%s2119_s5 + $0xd0] sm:$0xff] %vm734_vm2, %v705_v5  ;;  %1022 = vst.msk [vmem:[%s2120_s6 + $0xd0] sm:$0xff] %vm734_vm2, %v967_v6 }
 0x1e9   :  { %v1346_v7 = vpop.f32.mrb[44].mxu1  ;;  %v1402_v8 = vpop.f32.mrb[44].mxu0 }
 0x1ea   :  { %764 = vst.msk [vmem:[%s2119_s5 + $0xe8] sm:$0xff] %vm734_vm2, %v1346_v7  ;;  %1025 = vst.msk [vmem:[%s2120_s6 + $0xe8] sm:$0xff] %vm734_vm2, %v1402_v8  ;;  %v715_v9 = vpop.f32.mrb[45].mxu1  ;;  %v977_v10 = vpop.f32.mrb[45].mxu0 }
 0x1eb   :  { %763 = vst.msk [vmem:[%s2119_s5 + $0xe0] sm:$0xff] %vm734_vm2, %v715_v9  ;;  %1024 = vst.msk [vmem:[%s2120_s6 + $0xe0] sm:$0xff] %vm734_vm2, %v977_v10 }
 0x1ed   :  { %v1349_v11 = vpop.f32.mrb[46].mxu1  ;;  %v1405_v12 = vpop.f32.mrb[46].mxu0 }
 0x1ee   :  { %766 = vst.msk [vmem:[%s2119_s5 + $0xf8] sm:$0xff] %vm734_vm2, %v1349_v11  ;;  %1027 = vst.msk [vmem:[%s2120_s6 + $0xf8] sm:$0xff] %vm734_vm2, %v1405_v12  ;;  %v725_v13 = vpop.f32.mrb[47].mxu1  ;;  %v987_v14 = vpop.f32.mrb[47].mxu0 }
 0x1ef   :  { %765 = vst.msk [vmem:[%s2119_s5 + $0xf0] sm:$0xff] %vm734_vm2, %v725_v13  ;;  %1026 = vst.msk [vmem:[%s2120_s6 + $0xf0] sm:$0xff] %vm734_vm2, %v987_v14 }

</bundles_post_ra>
